<compile_context>
chip_gen: v7x
topology: tpu7x:2x2x1
jax: 0.10.0
libtpu: 0.0.40
codegen_flags: <defaults>
</compile_context>

<pallas_src>
import jax
import jax.numpy as jnp
from jax.experimental import pallas as pl
from jax.experimental.pallas import tpu as pltpu


# -----------------------------------------------------------------------------
# TTA transform / inverse-transform pairs, exactly as in BaseNet.tta_eval
# (PyTorch dims: 2 = H, 3 = W).
# -----------------------------------------------------------------------------
_TTA_PAIRS = (
    (lambda z: z,                                  lambda z: z),
    (lambda z: jnp.flip(z, 2),                     lambda z: jnp.flip(z, 2)),
    (lambda z: jnp.flip(z, 3),                     lambda z: jnp.flip(z, 3)),
    (lambda z: jnp.flip(jnp.swapaxes(z, 2, 3), 3), lambda z: jnp.swapaxes(jnp.flip(z, 3), 2, 3)),
    (lambda z: jnp.swapaxes(jnp.flip(z, 3), 2, 3), lambda z: jnp.flip(jnp.swapaxes(z, 2, 3), 3)),
    (lambda z: jnp.flip(jnp.flip(z, 2), 3),        lambda z: jnp.flip(jnp.flip(z, 3), 2)),
)


def _pick_tile_hw(hw: int, cap: int = 2048) -> int:
    """Largest lane-dense (multiple-of-128) tile of the flattened H*W axis that
    divides hw, capped so the double-buffered working set
        ~ 2 * (Cin + Cout) * tile * 4 B   (+ tiny w / b / accumulator)
    stays well under the scoped-VMEM default on every generation
    (16 MiB v5e, 32 MiB v6e, 32-of-64 MiB v7x). For cap=2048, Cin=4, Cout=8
    that is ~200 KiB — no vmem_limit_bytes override needed."""
    if hw <= cap:
        return hw                      # full-extent block is always layout-legal
    t = (cap // 128) * 128
    while t >= 128:
        if hw % t == 0:
            return t
        t -= 128
    return hw                          # fallback: single full-extent block


def _make_conv1x1_relu_acc_kernel(cin: int, cout: int, scale: float):
    """Kernel: accumulate ReLU(wT @ x + b) over the innermost (branch) grid axis
    into a VMEM accumulator; write the scaled sum to HBM once, on the last branch."""
    use_vpu = cin <= 8   # tiny contraction: a (Cout,Cin)x(Cin,T) matmul uses <0.2%
                         # of the MXU — unrolled VPU FMAs are cheaper.

    def kernel(x_ref, wT_ref, b_ref, o_ref, acc_ref):
        k = pl.program_id(2)

        @pl.when(k == 0)
        def _init():
            acc_ref[...] = jnp.zeros_like(acc_ref)

        x = x_ref[0, 0, :, :]                      # (Cin, T_HW), pixels on lanes
        if use_vpu:
            wT = wT_ref[...]                       # (Cout, Cin)
            y = wT[:, 0:1] * x[0:1, :]
            for c in range(1, cin):                # unrolled at trace time
                y = y + wT[:, c:c + 1] * x[c:c + 1, :]
            y = y + b_ref[...]
        else:
            # For large Cin, casting x/wT to bf16 here (keeping f32 accumulation)
            # would engage the MXU at full rate on v6e/v7x.
            y = jnp.dot(wT_ref[...], x, preferred_element_type=jnp.float32) + b_ref[...]

        acc_ref[...] = acc_ref[...] + jnp.maximum(y, 0.0)

        @pl.when(k == pl.num_programs(2) - 1)
        def _finalize():
            out = acc_ref[...]
            if scale != 1.0:
                out = out * scale
            o_ref[0] = out.astype(o_ref.dtype)

    return kernel


def _conv1x1_relu_fused(xs, w, b, *, scale):
    """xs: (K, N, Cin, HW) stacked branch inputs -> (N, Cout, HW) scaled sum of
    ReLU(1x1-conv(branch)) over the K branches, in a single pipelined pallas_call."""
    K, N, Cin, HW = xs.shape
    Cout = w.shape[1]
    T_HW = _pick_tile_hw(HW)

    wT = jnp.transpose(w)                          # (Cout, Cin)
    b2 = jnp.reshape(b, (Cout, 1))

    grid = (N, HW // T_HW, K)                      # branch axis innermost
    kernel = _make_conv1x1_relu_acc_kernel(Cin, Cout, scale)

    return pl.pallas_call(
        kernel,
        out_shape=jax.ShapeDtypeStruct((N, Cout, HW), jnp.float32),
        grid=grid,
        in_specs=[
            pl.BlockSpec((1, 1, Cin, T_HW), lambda n, j, k: (k, n, 0, j)),
            pl.BlockSpec((Cout, Cin), lambda n, j, k: (0, 0)),   # resident weights
            pl.BlockSpec((Cout, 1), lambda n, j, k: (0, 0)),     # resident bias
        ],
        out_specs=pl.BlockSpec((1, Cout, T_HW), lambda n, j, k: (n, 0, j)),
        scratch_shapes=[pltpu.VMEM((Cout, T_HW), jnp.float32)],
        compiler_params=pltpu.CompilerParams(
            dimension_semantics=("parallel", "parallel", "arbitrary")),
    )(xs, wT, b2)


def forward(x, w, b):
    """Synthetic BaseNet backbone forward: pointwise 1x1 conv + ReLU (NCHW in/out)."""
    N, C, H, W = x.shape
    Cout = w.shape[1]
    xs = x.reshape(1, N, C, H * W)                 # NCHW is already (C, H*W)-contiguous
    y = _conv1x1_relu_fused(xs, w, b, scale=1.0)
    return y.reshape(N, Cout, H, W)


def tta_eval(x, w, b):
    """BaseNet.tta_eval: mean of the 6 inverse-transformed forward passes."""
    N, C, H, W = x.shape
    Cout = w.shape[1]
    # Because the synthesized backbone is pointwise, inverse-transforming its
    # output equals forwarding the inverse-transformed input, so invT∘T is folded
    # onto the input side (exactly = x here); this lets one kernel accumulate all
    # 6 branches in VMEM and write the /6-scaled result to HBM exactly once.
    # TODO(synk): for a real spatial backbone (ResNet), apply invT to the kernel
    # outputs instead (post-kernel glue or in-kernel permuted DMAs).
    branches = [invT(T(x)) for (T, invT) in _TTA_PAIRS]
    xs = jnp.stack(branches, axis=0).reshape(len(_TTA_PAIRS), N, C, H * W)
    y = _conv1x1_relu_fused(xs, w, b, scale=1.0 / 6.0)
    return y.reshape(N, Cout, H, W)


if __name__ == "__main__":
    key = jax.random.PRNGKey(0)
    kx, kw, kb = jax.random.split(key, 3)

    N, C, H, W = 2, 4, 16, 16
    COUT = 8

    x = jax.random.normal(kx, (N, C, H, W), dtype=jnp.float32)
    w = jax.random.normal(kw, (C, COUT), dtype=jnp.float32) * 0.1
    b = jax.random.normal(kb, (COUT,), dtype=jnp.float32) * 0.01

    out = jax.block_until_ready(tta_eval(x, w, b))
    fwd = jax.block_until_ready(forward(x, w, b))

    # Pure-JAX reference, mirroring BaseNet.tta_eval literally.
    def ref_forward(z):
        y = jnp.einsum('nchw,ck->nkhw', z, w) + b.reshape(1, COUT, 1, 1)
        return jnp.maximum(y, 0.0)

    r = ref_forward(x)
    r = r + jnp.flip(ref_forward(jnp.flip(x, 2)), 2)
    r = r + jnp.flip(ref_forward(jnp.flip(x, 3)), 3)
    r = r + jnp.swapaxes(jnp.flip(ref_forward(jnp.flip(jnp.swapaxes(x, 2, 3), 3)), 3), 2, 3)
    r = r + jnp.flip(jnp.swapaxes(ref_forward(jnp.swapaxes(jnp.flip(x, 3), 2, 3)), 2, 3), 3)
    r = r + jnp.flip(jnp.flip(ref_forward(jnp.flip(jnp.flip(x, 2), 3)), 3), 2)
    ref = r / 6.0

    assert out.shape == (N, COUT, H, W)
    assert jnp.allclose(fwd, ref_forward(x), atol=1e-5, rtol=1e-5)
    assert jnp.allclose(out, ref, atol=1e-5, rtol=1e-5)
    print("KERNEL_OK")
</pallas_src>

<mosaic_0001>
module attributes {stable_mosaic.version = 11 : i64} {
  func.func @kernel(%arg0: i32, %arg1: i32, %arg2: i32, %arg3: memref<1x1x4x256xf32, #tpu.memory_space<vmem>>, %arg4: memref<8x4xf32, #tpu.memory_space<vmem>>, %arg5: memref<8x1xf32, #tpu.memory_space<vmem>>, %arg6: memref<1x8x256xf32, #tpu.memory_space<vmem>>, %arg7: memref<8x256xf32, #tpu.memory_space<vmem>>) attributes {dimension_semantics = [#tpu.dimension_semantics<parallel>, #tpu.dimension_semantics<parallel>, #tpu.dimension_semantics<arbitrary>], iteration_bounds = array<i64: 2, 1, 6>, scalar_prefetch = 0 : i64, scratch_operands = 1 : i64, tpu.core_type = #tpu.core_type<tc>, window_params = [{transform_indices = @transform_0, window_bounds = array<i64: 1, 1, 4, 256>}, {pipeline_mode = #tpu.pipeline_mode<synchronous>, transform_indices = @transform_1, window_bounds = array<i64: 8, 4>}, {pipeline_mode = #tpu.pipeline_mode<synchronous>, transform_indices = @transform_2, window_bounds = array<i64: 8, 1>}, {transform_indices = @transform_3, window_bounds = array<i64: 1, 8, 256>}]} {
    %c0_i32 = arith.constant 0 : i32
    %0 = arith.cmpi eq, %arg2, %c0_i32 : i32
    %1 = arith.extui %0 : i1 to i32
    %c0_i32_0 = arith.constant 0 : i32
    %2 = arith.cmpi ne, %1, %c0_i32_0 : i32
    scf.if %2 {
      %cst_13 = arith.constant 0.000000e+00 : f32
      %40 = vector.broadcast %cst_13 : f32 to vector<8x256xf32>
      %c0_14 = arith.constant 0 : index
      %c0_15 = arith.constant 0 : index
      %41 = vector.load %arg7[%c0_14, %c0_15] : memref<8x256xf32, #tpu.memory_space<vmem>>, vector<8x256xf32>
      tpu.vector_store %arg7[%c0_14, %c0_15], %40 {strides = array<i32>} : memref<8x256xf32, #tpu.memory_space<vmem>>, vector<8x256xf32>,
    } else {
    }
    %c0 = arith.constant 0 : index
    %c0_1 = arith.constant 0 : index
    %c0_2 = arith.constant 0 : index
    %c0_3 = arith.constant 0 : index
    %3 = vector.load %arg3[%c0, %c0_1, %c0_2, %c0_3] : memref<1x1x4x256xf32, #tpu.memory_space<vmem>>, vector<1x1x4x256xf32>
    %4 = vector.shape_cast %3 : vector<1x1x4x256xf32> to vector<4x256xf32>
    %c0_4 = arith.constant 0 : index
    %c0_5 = arith.constant 0 : index
    %5 = vector.load %arg4[%c0_4, %c0_5] : memref<8x4xf32, #tpu.memory_space<vmem>>, vector<8x4xf32>
    %6 = vector.extract_strided_slice %5 {offsets = [0, 0], sizes = [8, 1], strides = [1, 1]} : vector<8x4xf32> to vector<8x1xf32>
    %7 = vector.extract_strided_slice %4 {offsets = [0, 0], sizes = [1, 256], strides = [1, 1]} : vector<4x256xf32> to vector<1x256xf32>
    %8 = vector.broadcast %6 : vector<8x1xf32> to vector<8x256xf32>
    %9 = vector.broadcast %7 : vector<1x256xf32> to vector<8x256xf32>
    %10 = arith.mulf %8, %9 : vector<8x256xf32>
    %11 = vector.extract_strided_slice %5 {offsets = [0, 1], sizes = [8, 1], strides = [1, 1]} : vector<8x4xf32> to vector<8x1xf32>
    %12 = vector.extract_strided_slice %4 {offsets = [1, 0], sizes = [1, 256], strides = [1, 1]} : vector<4x256xf32> to vector<1x256xf32>
    %13 = vector.broadcast %11 : vector<8x1xf32> to vector<8x256xf32>
    %14 = vector.broadcast %12 : vector<1x256xf32> to vector<8x256xf32>
    %15 = arith.mulf %13, %14 : vector<8x256xf32>
    %16 = arith.addf %10, %15 : vector<8x256xf32>
    %17 = vector.extract_strided_slice %5 {offsets = [0, 2], sizes = [8, 1], strides = [1, 1]} : vector<8x4xf32> to vector<8x1xf32>
    %18 = vector.extract_strided_slice %4 {offsets = [2, 0], sizes = [1, 256], strides = [1, 1]} : vector<4x256xf32> to vector<1x256xf32>
    %19 = vector.broadcast %17 : vector<8x1xf32> to vector<8x256xf32>
    %20 = vector.broadcast %18 : vector<1x256xf32> to vector<8x256xf32>
    %21 = arith.mulf %19, %20 : vector<8x256xf32>
    %22 = arith.addf %16, %21 : vector<8x256xf32>
    %23 = vector.extract_strided_slice %5 {offsets = [0, 3], sizes = [8, 1], strides = [1, 1]} : vector<8x4xf32> to vector<8x1xf32>
    %24 = vector.extract_strided_slice %4 {offsets = [3, 0], sizes = [1, 256], strides = [1, 1]} : vector<4x256xf32> to vector<1x256xf32>
    %25 = vector.broadcast %23 : vector<8x1xf32> to vector<8x256xf32>
    %26 = vector.broadcast %24 : vector<1x256xf32> to vector<8x256xf32>
    %27 = arith.mulf %25, %26 : vector<8x256xf32>
    %28 = arith.addf %22, %27 : vector<8x256xf32>
    %c0_6 = arith.constant 0 : index
    %c0_7 = arith.constant 0 : index
    %29 = vector.load %arg5[%c0_6, %c0_7] : memref<8x1xf32, #tpu.memory_space<vmem>>, vector<8x1xf32>
    %30 = vector.broadcast %29 : vector<8x1xf32> to vector<8x256xf32>
    %31 = arith.addf %28, %30 : vector<8x256xf32>
    %c0_8 = arith.constant 0 : index
    %c0_9 = arith.constant 0 : index
    %32 = vector.load %arg7[%c0_8, %c0_9] : memref<8x256xf32, #tpu.memory_space<vmem>>, vector<8x256xf32>
    %cst = arith.constant 0.000000e+00 : f32
    %33 = vector.broadcast %cst : f32 to vector<8x256xf32>
    %34 = arith.maximumf %31, %33 : vector<8x256xf32>
    %35 = arith.addf %32, %34 : vector<8x256xf32>
    %c0_10 = arith.constant 0 : index
    %c0_11 = arith.constant 0 : index
    %36 = vector.load %arg7[%c0_10, %c0_11] : memref<8x256xf32, #tpu.memory_space<vmem>>, vector<8x256xf32>
    tpu.vector_store %arg7[%c0_10, %c0_11], %35 {strides = array<i32>} : memref<8x256xf32, #tpu.memory_space<vmem>>, vector<8x256xf32>,
    %c5_i32 = arith.constant 5 : i32
    %37 = arith.cmpi eq, %arg2, %c5_i32 : i32
    %38 = arith.extui %37 : i1 to i32
    %c0_i32_12 = arith.constant 0 : i32
    %39 = arith.cmpi ne, %38, %c0_i32_12 : i32
    scf.if %39 {
      %c0_13 = arith.constant 0 : index
      %c0_14 = arith.constant 0 : index
      %40 = vector.load %arg7[%c0_13, %c0_14] : memref<8x256xf32, #tpu.memory_space<vmem>>, vector<8x256xf32>
      %cst_15 = arith.constant 0.166666672 : f32
      %41 = vector.broadcast %cst_15 : f32 to vector<8x256xf32>
      %42 = arith.mulf %40, %41 : vector<8x256xf32>
      %c0_16 = arith.constant 0 : index
      %c0_17 = arith.constant 0 : index
      %c0_18 = arith.constant 0 : index
      %43 = vector.load %arg6[%c0_16, %c0_17, %c0_18] : memref<1x8x256xf32, #tpu.memory_space<vmem>>, vector<1x8x256xf32>
      %44 = vector.shape_cast %43 : vector<1x8x256xf32> to vector<8x256xf32>
      %45 = vector.shape_cast %42 : vector<8x256xf32> to vector<1x8x256xf32>
      tpu.vector_store %arg6[%c0_16, %c0_17, %c0_18], %45 {strides = array<i32>} : memref<1x8x256xf32, #tpu.memory_space<vmem>>, vector<1x8x256xf32>,
    } else {
    }
    return
  }
  func.func @transform_0(%arg0: i32, %arg1: i32, %arg2: i32) -> (i32, i32, i32, i32) {
    %c0_i32 = arith.constant 0 : i32
    %c0_i32_0 = arith.constant 0 : i32
    return %arg2, %arg0, %c0_i32, %arg1 : i32, i32, i32, i32
  }
  func.func @transform_1(%arg0: i32, %arg1: i32, %arg2: i32) -> (i32, i32) {
    %c0_i32 = arith.constant 0 : i32
    %c0_i32_0 = arith.constant 0 : i32
    %c0_i32_1 = arith.constant 0 : i32
    return %c0_i32, %c0_i32_0 : i32, i32
  }
  func.func @transform_2(%arg0: i32, %arg1: i32, %arg2: i32) -> (i32, i32) {
    %c0_i32 = arith.constant 0 : i32
    %c0_i32_0 = arith.constant 0 : i32
    %c0_i32_1 = arith.constant 0 : i32
    return %c0_i32, %c0_i32_0 : i32, i32
  }
  func.func @transform_3(%arg0: i32, %arg1: i32, %arg2: i32) -> (i32, i32, i32) {
    %c0_i32 = arith.constant 0 : i32
    %c0_i32_0 = arith.constant 0 : i32
    return %arg0, %c0_i32, %arg1 : i32, i32, i32
  }
}

</mosaic_0001>

<bundles_post_ra>
// kernel: tpu_custom_call.1
= control target key start
LH: loop header
LB: loop body
LE: loop exit
PB: predicated region body
PF: predicated region fallthrough
CT: control target
= control target key end

     0   :  { %8 = vsyncpa [#allocation4], 0  ;;  %s1012_s0 = inlined_call_operand.hbm [shape: f32[6,2,4,256], index: 0, kind: input, shape index: {}]   ;;  %s1013_s1 = inlined_call_operand.vmem [shape: f32[8,4], index: 1, kind: input, shape index: {}]   ;;  %s1014_s2 = inlined_call_operand.vmem [shape: f32[8,1], index: 2, kind: input, shape index: {}]   ;;  %s1015_s3 = inlined_call_operand.hbm [shape: f32[2,8,256], index: 3, kind: output, shape index: {}]  }
   0x1   :  { %10 = vsyncpa [#allocation4 + $0x1], 0 }
   0x2   :  { %11 = vsyncpa [#allocation5], 0 }
   0x3   :  { %13 = vsyncpa [#allocation5 + $0x1], 0  ;;  %s778_s12 = smov 0   ;;  %s780_s13 = smov 0  }
   0x4   :  { %s782_s14 = smov 0   ;;  %s784_s15 = smov 0  }
   0x5   :  { %s786_s16 = smov 0   ;;  %s788_s17 = smov 0  }
   0x6   :  { %s790_s18 = smov 0   ;;  %s792_s19 = smov 0  }
   0x7   :  { %s794_s20 = smov 0   ;;  %s796_s21 = smov 0  }
   0x8   :  { %s798_s22 = smov 0  }
   0x9 LB: > { %s465_s23 = sadd.s32 4294967295, %s749_s22   ;;  %s466_s24 = sadd.s32 4294967294, %s749_s22   ;;  %s749_s22 = sphi %s798_s22, %s19_s22   ;;  %s745_s21 = sphi %s796_s21, %s1043_s21   ;;  %s741_s20 = sphi %s794_s20, %s1042_s20   ;;  %s737_s19 = sphi %s792_s19, %s1041_s19   ;;  %s733_s18 = sphi %s790_s18, %s1040_s18   ;;  %s729_s17 = sphi %s788_s17, %s1039_s17   ;;  %s725_s16 = sphi %s786_s16, %s1038_s16   ;;  %s721_s15 = sphi %s784_s15, %s1037_s15   ;;  %s717_s14 = sphi %s782_s14, %s1036_s14   ;;  %s713_s13 = sphi %s780_s13, %s1035_s13   ;;  %s709_s12 = sphi %s778_s12, %s1034_s12  }
   0xa   : > { %s31_s25 = sadd.s32 1, %s741_s20  ;;  %s38_s26 = sadd.s32 1, %s745_s21 }
   0xb   : > { %p32_p0 = scmp.ge.s32.totalorder %s31_s25, 6  ;;  %s49_s27 = sadd.s32 1, %s729_s17 }
   0xc   : > { %p56_p1 = scmp.ne.s32.totalorder %s729_s17, %s725_s16  ;;  %p57_p2 = scmp.eq.s32.totalorder %s749_s22, 0 }
   0xd   : > { %s1045_s25 = smov (%p32_p0, %s31_s25), 0  ;;  %s1047_s26 = smov (!%p32_p0, %s38_s26), %s745_s21 }
   0xe   : > { %1019 = sst [smem:[#allocation9_spill]] %s1045_s25  ;;  %s42_s28 = ssub.s32 %s741_s20, %s1045_s25 }
   0xf   : > { %p844_p3 = por %p57_p2, %p56_p1  ;;  %p40_p4 = scmp.ge.s32.totalorder %s1047_s26, 2 }
  0x10   : > { %p62_p5 = scmp.ne.s32.totalorder %s725_s16, %s721_s15  ;;  %p63_p6 = scmp.eq.s32.totalorder %s465_s23, 0 }
  0x11   : > { %s119_s30 = sadd.s32 1, %s717_s14  ;;  %s1049_s26 = smov (%p40_p4, %s1047_s26), 0 }
  0x12   : > { %1021 = sst [smem:[#allocation10_spill]] %s1049_s26  ;;  %p852_p7 = por %p63_p6, %p62_p5 }
  0x13   : > { %p129_p8 = scmp.ne.s32.totalorder %s717_s14, %s713_s13  ;;  %s43_s5 = ssub.s32 %s745_s21, %s1049_s26 }
  0x14   : > { %p130_p9 = scmp.eq.s32.totalorder %s465_s23, 11  ;;  %s44_s6 = sor.u32 %s43_s5, %s42_s28 }
  0x15   : > { %p117_p10 = scmp.eq.s32.totalorder %s43_s5, 0  ;;  %p47_p11 = scmp.eq.s32.totalorder %s44_s6, 0 }
  0x16   : > { %p860_p12 = por %p130_p9, %p129_p8  ;;  %p135_p13 = scmp.ne.s32.totalorder %s713_s13, %s709_s12 }
  0x17   : > { %s865_s8 = scalar_select %p117_p10, %s717_s14, %s119_s30  }
  0x18   : > { %s1023_s7 = scalar_select %p860_p12, 1, 0 }
  0x19   : > { %s868_s9 = scalar_select %p47_p11, %s729_s17, %s49_s27  }
  0x1a   : > { %p136_p0 = scmp.eq.s32.totalorder %s466_s24, 11  ;;  %p496_p1 = scmp.lt.s32.totalorder %s749_s22, 12 }
  0x1b   : > { %1024 = sst [smem:[#allocation11_spill]] %s868_s9  ;;  %s162_s11 = sand.u32 1, %s729_s17  }
  0x1c   : > { %p873_p2 = por %p136_p0, %p135_p13  ;;  %s469_s15 = sshll.u32 %s162_s11, 3 }
  0x1d   : > { %s470_s23 = sshll.u32 %s745_s21, 1  ;;  %s471_s28 = sshll.u32 %s741_s20, 2 }
  0x1e   : > { %s1025_s10 = scalar_select %p873_p2, 1, 0 }
  0x1f   : > { %s166_s5 = scalar_lea.vmem [#allocation3], %s469_s15  ;;  %s174_s26 = sadd.s32 %s471_s28, %s470_s23 }
  0x20   : > { %s178_s6 = sshll.u32 %s166_s5, 4  ;;  %s472_s27 = sshll.u32 %s174_s26, 6  ;;  %s880_s6 = int_to_ptr.vmem [resolvable:$true] %s178_s6 }
  0x21   : > { %p884_p4 = pnand %p496_p1, %p844_p3  ;;  %s891_s9 = scalar_lea.hbm %s1012_s0, %s472_s27 }
  0x22   : > { %s163_s15 = scalar_lea.sflag [#allocation4], %s162_s11  ;;  %s597_s26 = scalar_lea.hbm %s891_s9, 128 }
  0x23   : > { %p598_p8 = scmp.ne.s32.totalorder %s891_s9, %s597_s26  ;;  %p599_p3 = pneg %p884_p4 }
  0x24   : > { %s602_s23 = scalar_lea.hbm %s1012_s0, 1536  ;;  %p603_p11 = scmp.lt.u32.totalorder %s891_s9, %s1012_s0 }
  0x25   : > { %p600_p9 = pnand %p599_p3, %p598_p8  ;;  %p604_p13 = scmp.lt.u32.totalorder %s602_s23, %s597_s26 }
  0x26   : > { %p606_p1 = scmp.lt.u32.totalorder %s597_s26, %s891_s9 }
  0x27   : > { %p601_p10 = pneg %p600_p9  ;;  %p605_p0 = por %p604_p13, %p603_p11 }
  0x29   : > { %p607_p5 = por %p606_p1, %p605_p0 }
  0x2b   : > { %p608_p6 = pnand %p607_p5, %p601_p10 }
  0x2d   : > { %611 = shalt.err (!%p608_p6)
}
  0x2e   : > { %s612_s11 = scalar_lea.vmem %s880_s6, 128  ;;  %s751_s27 = smov [#allocation3]  }
  0x2f   : > { %p613_p8 = scmp.ne.s32.totalorder %s880_s6, %s612_s11  ;;  %s617_s24 = sshll.u32 %s751_s27, 4  ;;  %s618_s24 = int_to_ptr.vmem [resolvable:$false] %s617_s24 }
  0x30   : > { %s619_s25 = scalar_lea.vmem %s618_s24, 256  ;;  %p620_p12 = scmp.lt.s32.totalorder %s880_s6, %s618_s24 }
  0x31   : > { %p615_p9 = pnand %p613_p8, %p599_p3  ;;  %p621_p11 = scmp.lt.s32.totalorder %s619_s25, %s612_s11 }
  0x33   : > { %p616_p2 = pneg %p615_p9  ;;  %p622_p13 = por %p621_p11, %p620_p12 }
  0x35   : > { %p623_p0 = pnand %p622_p13, %p616_p2 }
  0x37   : > { %626 = shalt.err (!%p623_p0)
}
  0x38   : > { %491 = dma.hbm_to_vmem [thread:$0]  (!%p884_p4), %s891_s9, 128, %s880_s6, %s163_s15  }
  0x39   : > { %p1027_p5 = scmp.lt.s32.totalorder %s749_s22, 13  ;;  %p1028_p6 = scmp.ge.s32.totalorder %s749_s22, 1 }
  0x3b   : > { %p184_p3 = pnand %p1028_p6, %p1027_p5 }
  0x3c   : > { %s189_s26 = sand.u32 (!%p184_p3), 1, %s725_s16  }
  0x3d   : > { %187 = sbr.rel (%p184_p3) target bundleno = 263 (0x107), region = 32  ;;  %s925_s29 = sshll.u32 (!%p184_p3), %s189_s26, 3 }
  0x3e   : > { %s190_s23 = scalar_lea.sflag (!%p184_p3), [#allocation4], %s189_s26  ;;  %s193_s28 = scalar_lea.vmem (!%p184_p3), [#allocation3], %s925_s29 }
  0x44   : > { %700 = dma.done.wait (%p852_p7), %s190_s23, 128  }
  0x45   : > { %702 = vsyncadd (%p852_p7), %s190_s23, 4294967168  ;;  %s213_s9 = sand.u32 1, %s713_s13   ;;  %p476_p12 = scmp.ne.s32.totalorder %s733_s18, 0 }
  0x46   : > { %s475_s6 = sshll.u32 %s213_s9, 4  ;;  %v752_v0 = vmov (!%p476_p12), 0.0  }
  0x47   : > { %s935_s30 = scalar_lea.vmem [#allocation6], %s475_s6  ;;  %221 = sbr.rel (%p476_p12) target bundleno = 78 (0x4e), region = 40  ;;  %222 = vst [vmem:[#allocation2] sm:$0xff] (!%p476_p12), %v752_v0  ;;  %223 = vst [vmem:[#allocation2 + $0x8] sm:$0xff] (!%p476_p12), %v752_v0 }
  0x4e PF: > { %v225_v1 = vld [vmem:[%s1013_s1] sm:$0xff]  ;;  %v753_v2 = vmov 0   ;;  %v754_v3 = vmov 2   ;;  %v755_v4 = vmov 1   ;;  %v756_v5 = vmov 3   ;;  %v224_v13 = vld [vmem:[%s193_s28] sm:$0xff] }
  0x4f   : > { %591 = vset.pattern.permute.xlu0 %v753_v2  ;;  %593 = vset.pattern.permute.xlu1 %v754_v3  ;;  %v330_v6 = vld [vmem:[%s1014_s2] sm:$0xff]  ;;  %v232_v7 = vlaneseq  ;;  %v339_v56 = vld [vmem:[#allocation2 + $0x8] sm:$0xff]  ;;  %p477_p7 = scmp.ne.s32.totalorder %s733_s18, 5 }
  0x50   : > { %228 = vperm.xlu0 %591, %v225_v1   ;;  %279 = vperm.xlu1 %593, %v225_v1   ;;  %v338_v55 = vld [vmem:[#allocation2] sm:$0xff] }
  0x51   : > { %v233_v8 = vshrl.u32 %v232_v7, 7 }
  0x53   : > { %v234_v9 = vsub.s32 0, %v233_v8  ;;  %v238_v10 = vsub.s32 4, %v233_v8  ;;  %v258_v11 = vsub.s32 1, %v233_v8  ;;  %v262_v12 = vsub.s32 5, %v233_v8 }
  0x54   : > { %592 = vset.pattern.permute.xlu0 %v755_v4  ;;  %594 = vset.pattern.permute.xlu1 %v756_v5  ;;  %v284_v14 = vsub.s32 2, %v233_v8  ;;  %v288_v15 = vsub.s32 6, %v233_v8  ;;  %v310_v16 = vsub.s32 3, %v233_v8  ;;  %v314_v17 = vsub.s32 7, %v233_v8 }
  0x55   : > { %253 = vperm.xlu0 %592, %v225_v1   ;;  %305 = vperm.xlu1 %594, %v225_v1   ;;  %v235_v18 = vrot.slane %v224_v13, %v234_v9  ;;  %v239_v19 = vrot.slane %v224_v13, %v238_v10  ;;  %v259_v20 = vrot.slane %v224_v13, %v258_v11 }
  0x56   : > { %v263_v21 = vrot.slane %v224_v13, %v262_v12  ;;  %v285_v22 = vrot.slane %v224_v13, %v284_v14  ;;  %v289_v23 = vrot.slane %v224_v13, %v288_v15  ;;  %v311_v26 = vrot.slane %v224_v13, %v310_v16 }
  0x57   : > { %v315_v27 = vrot.slane %v224_v13, %v314_v17  ;;  %v245_v28 = vrot.slane %v235_v18, %v234_v9  ;;  %v249_v29 = vrot.slane %v239_v19, %v234_v9  ;;  %v269_v30 = vrot.slane %v259_v20, %v258_v11 }
  0x58   : > { %v273_v31 = vrot.slane %v263_v21, %v258_v11  ;;  %v295_v32 = vrot.slane %v285_v22, %v284_v14  ;;  %v299_v33 = vrot.slane %v289_v23, %v284_v14  ;;  %v321_v34 = vrot.slane %v311_v26, %v310_v16 }
  0x59   : > { %595 = vset.pattern.permute.xlu1 %v753_v2  ;;  %596 = vset.pattern.permute.xlu0 %v753_v2  ;;  %v325_v35 = vrot.slane %v315_v27, %v310_v16 }
  0x5a   : > { %333 = vperm.xlu1 %595, %v330_v6  }
  0xcf   : > { %v229_v24 = vpop.permute.xlu0 %228  ;;  %v280_v25 = vpop.permute.xlu1 %279 }
  0xd0   : > { %v250_v38 = vmul.f32 %v245_v28, %v229_v24  ;;  %v251_v39 = vmul.f32 %v249_v29, %v229_v24  ;;  %v300_v42 = vmul.f32 %v295_v32, %v280_v25  ;;  %v301_v43 = vmul.f32 %v299_v33, %v280_v25 }
  0xd4   : > { %v254_v36 = vpop.permute.xlu0 %253  ;;  %v306_v37 = vpop.permute.xlu1 %305 }
  0xd5   : > { %v274_v40 = vmul.f32 %v269_v30, %v254_v36  ;;  %v275_v41 = vmul.f32 %v273_v31, %v254_v36  ;;  %v326_v46 = vmul.f32 %v321_v34, %v306_v37  ;;  %v327_v47 = vmul.f32 %v325_v35, %v306_v37 }
  0xd7   : > { %v276_v44 = vadd.f32 %v274_v40, %v250_v38  ;;  %v277_v45 = vadd.f32 %v275_v41, %v251_v39 }
  0xd9   : > { %v302_v48 = vadd.f32 %v300_v42, %v276_v44  ;;  %v303_v49 = vadd.f32 %v301_v43, %v277_v45  ;;  %v334_v50 = vpop.permute.xlu1 %333 }
  0xdb   : > { %v328_v51 = vadd.f32 %v326_v46, %v302_v48  ;;  %v329_v52 = vadd.f32 %v327_v47, %v303_v49 }
  0xdd   : > { %v336_v53 = vadd.f32 %v334_v50, %v328_v51  ;;  %v337_v54 = vadd.f32 %v334_v50, %v329_v52  ;;  %349 = sbr.rel (%p477_p7) target bundleno = 238 (0xee), region = 44 }
  0xdf   : > { %v340_v57 = vmax.f32 %v336_v53, 0.0  ;;  %v341_v58 = vmax.f32 %v337_v54, 0.0 }
  0xe1   : > { %v342_v59 = vadd.f32 %v340_v57, %v338_v55  ;;  %v343_v60 = vadd.f32 %v341_v58, %v339_v56 }
  0xe3   : > { %344 = vst [vmem:[#allocation2] sm:$0xff] %v342_v59  ;;  %345 = vst [vmem:[#allocation2 + $0x8] sm:$0xff] %v343_v60 }
  0xea   : > { %v350_v61 = vld [vmem:[#allocation2] sm:$0xff]  ;;  %v351_v62 = vld [vmem:[#allocation2 + $0x8] sm:$0xff] }
  0xeb   : > { %v352_v63 = vmul.f32 0.16666667, %v350_v61  ;;  %v353_v0 = vmul.f32 0.16666667, %v351_v62 }
  0xed   : > { %354 = vst [vmem:[%s935_s30] sm:$0xff] %v352_v63  ;;  %355 = vst [vmem:[%s935_s30 + $0x8] sm:$0xff] %v353_v0 }
  0xee PF: > { %s483_s27 = sshll.u32 %s737_s19, 8  ;;  %s373_s18 = sshll.u32 %s935_s30, 4  ;;  %s374_s18 = int_to_ptr.vmem [resolvable:$true] %s373_s18 }
  0xef   : > { %s953_s26 = scalar_lea.hbm %s1015_s3, %s483_s27  ;;  %s357_s29 = scalar_lea.sflag [#allocation5], %s213_s9 }
  0xf0   : > { %s627_s23 = scalar_lea.vmem %s374_s18, 256  ;;  %p1029_p4 = scmp.ne.s32.totalorder %s1023_s7, 0 }
  0xf1   : > { %p628_p2 = scmp.ne.s32.totalorder %s374_s18, %s627_s23  ;;  %s757_s28 = smov [#allocation6]  }
  0xf2   : > { %s631_s6 = sshll.u32 %s757_s28, 4  ;;  %s632_s6 = int_to_ptr.vmem [resolvable:$false] %s631_s6 }
  0xf3   : > { %p629_p10 = pnand %p628_p2, %p1029_p4  ;;  %s633_s15 = scalar_lea.vmem %s632_s6, 512 }
  0xf4   : > { %p634_p8 = scmp.lt.s32.totalorder %s374_s18, %s632_s6  ;;  %p635_p9 = scmp.lt.s32.totalorder %s633_s15, %s627_s23 }
  0xf5   : > { %p630_p1 = pneg %p629_p10 }
  0xf6   : > { %p636_p11 = por %p635_p9, %p634_p8 }
  0xf8   : > { %p637_p13 = pnand %p636_p11, %p630_p1 }
  0xfa   : > { %640 = shalt.err (!%p637_p13)
}
  0xfb   : > { %s641_s19 = scalar_lea.hbm %s953_s26, 256  ;;  %s645_s5 = scalar_lea.hbm %s1015_s3, 512 }
  0xfc   : > { %p642_p0 = scmp.ne.s32.totalorder %s953_s26, %s641_s19  ;;  %p646_p3 = scmp.lt.u32.totalorder %s953_s26, %s1015_s3 }
  0xfd   : > { %p647_p12 = scmp.lt.u32.totalorder %s645_s5, %s641_s19  ;;  %p649_p2 = scmp.lt.u32.totalorder %s641_s19, %s953_s26 }
  0xfe   : > { %p643_p5 = pnand %p642_p0, %p1029_p4 }
  0xff   : > { %p648_p7 = por %p647_p12, %p646_p3 }
 0x100   : > { %p644_p6 = pneg %p643_p5 }
 0x101   : > { %p650_p10 = por %p649_p2, %p648_p7 }
 0x103   : > { %p651_p1 = pnand %p650_p10, %p644_p6 }
 0x105   : > { %654 = shalt.err (!%p651_p1)
}
 0x106   : > { %486 = dma.vmem_to_hbm [thread:$0]  (%p1029_p4), %s374_s18, 256, %s953_s26, %s357_s29  }
 0x107 PF: > { %p497_p8 = scmp.ge.s32.totalorder %s749_s22, 2  ;;  %s385_s27 = sand.u32 1, %s709_s12  }
 0x108   : > { %p1030_p9 = scmp.ne.s32.totalorder %s1025_s10, 0  ;;  %s386_s24 = scalar_lea.sflag [#allocation5], %s385_s27 }
 0x10a   : > { %p493_p11 = pnand %p497_p8, %p1030_p9 }
 0x10c   : > { %704 = dma.done.wait (!%p493_p11), %s386_s24, 256  }
 0x10d   : > { %706 = vsyncadd (!%p493_p11), %s386_s24, 4294967040  ;;  %s19_s22 = sadd.s32 1, %s749_s22   ;;  %s1031_s7 = sld [smem:[#allocation11_spill]] }
 0x10e   : > { %p16_p13 = scmp.ge.s32.totalorder %s19_s22, 14   ;;  %s1032_s25 = sld [smem:[#allocation9_spill]] }
 0x10f   : > { %s1033_s26 = sld [smem:[#allocation10_spill]]  ;;  %s1034_s12 = smov %s713_s13 }
 0x110   : > { %s1035_s13 = smov %s717_s14  ;;  %s1036_s14 = smov %s865_s8 }
 0x111   : > { %s1037_s15 = smov %s725_s16  ;;  %s1038_s16 = smov %s729_s17 }
 0x112   : > { %s1040_s18 = smov %s741_s20  ;;  %s1041_s19 = smov %s745_s21 }
 0x113   : > { %s1039_s17 = smov %s1031_s7  ;;  %18 = sbr.rel (!%p16_p13) target bundleno = 9 (0x9), region = 85 }
 0x114   : > { %s1042_s20 = smov %s1032_s25 }
 0x115   : > { %s1043_s21 = smov %s1033_s26 }
 0x11a   :  { %391 = vsyncpa [#allocation4], 1 }
 0x11b   :  { %393 = vsyncpa [#allocation4 + $0x1], 1 }
 0x11c   :  { %394 = vsyncpa [#allocation5], 1 }
 0x11d   :  { %396 = vsyncpa [#allocation5 + $0x1], 1 }

</bundles_post_ra>
